<compile_context>
chip_gen: v7x
topology: tpu7x:2x2x1
jax: 0.10.0
libtpu: 0.0.40
codegen_flags: <defaults>
</compile_context>

<pallas_src>
import functools

import jax
import jax.numpy as jnp
from jax.experimental import pallas as pl
from jax.experimental.pallas import tpu as pltpu


def _silu(x):
    # x * sigmoid(x) in single-tanh form: one EUP op per element.
    return x * 0.5 * (jnp.tanh(0.5 * x) + 1.0)


def _edge_message_kernel(
    x_src_ref, x_dst_ref, hs_ref, hd_ref,
    w1r_ref, w1s_ref, w1d_ref, b1_ref,
    w2_ref, b2_ref,
    w3_ref, b3_ref,
    w4_ref,
    rt_ref, ef_ref,
    *, use_tanh: bool,
):
    f32 = jnp.float32
    bf16 = jnp.bfloat16

    # coord_diff = src.x - dst.x                                    (3, T) f32
    d = x_src_ref[...] - x_dst_ref[...]
    # radial0 = sum(coord_diff ** 2) over the coordinate axis       (1, T) f32
    radial = jnp.sum(d * d, axis=0, keepdims=True)

    # edge_mlp layer 1 on cat([radial, hh_src, hh_dst]):
    #   - radial column of W1 is a K=1 contraction -> VPU broadcast mul (f32)
    #   - src / dst node-feature blocks: two bf16 MXU dots, f32 accumulate
    h1 = (
        w1r_ref[...] * radial
        + jnp.dot(w1s_ref[...], hs_ref[...].astype(bf16),
                  preferred_element_type=f32)
        + jnp.dot(w1d_ref[...], hd_ref[...].astype(bf16),
                  preferred_element_type=f32)
        + b1_ref[...]
    )
    h1 = _silu(h1)

    # edge_mlp layer 2                                              (H, T)
    ef = _silu(
        jnp.dot(w2_ref[...], h1.astype(bf16), preferred_element_type=f32)
        + b2_ref[...]
    )
    ef_ref[...] = ef

    # coord_mlp: Linear -> SiLU -> Linear(out=1, no bias) [-> Tanh]
    c1 = _silu(
        jnp.dot(w3_ref[...], ef.astype(bf16), preferred_element_type=f32)
        + b3_ref[...]
    )
    # N=1 projection as multiply + sublane reduction (no degenerate MXU pass)
    c2 = jnp.sum(w4_ref[...] * c1, axis=0, keepdims=True)           # (1, T)
    if use_tanh:
        c2 = jnp.tanh(c2)

    # Single (4, T) output slab: row 0 = radial, rows 1..3 = trans.
    rt_ref[0:1, :] = radial
    rt_ref[1:4, :] = d * c2


def relative_position_cord_message(
    x_src_t, x_dst_t, hh_src_t, hh_dst_t, params, *,
    use_tanh=True, tile_e=8192, vmem_limit_bytes=None,
):
    """Feature-major interface.

    x_src_t / x_dst_t: [3, E] f32; hh_src_t / hh_dst_t: [F, E] f32.
    Returns feature-major outputs: radial [1, E], trans [3, E],
    edge_feature [H, E].  Keeping edges on the lane axis end-to-end avoids
    host-side transpose / concat passes over the per-edge arrays.
    """
    C, E = x_src_t.shape
    F = hh_src_t.shape[0]
    H = params["w2"].shape[0]

    # Tiling: bound padding to ~n_tiles*128 phantom edges (not tile-1) and
    # keep >= 2 tiles when E allows so both v7x TensorCores get work.
    n_tiles = max(1, pl.cdiv(E, int(tile_e)))
    if n_tiles == 1 and E >= 256:
        n_tiles = 2
    tile = max(128, pl.cdiv(pl.cdiv(E, n_tiles), 128) * 128)
    e_pad = n_tiles * tile
    pad = e_pad - E

    def prep(a):
        a = a.astype(jnp.float32)
        return jnp.pad(a, ((0, 0), (0, pad))) if pad else a

    xs = prep(x_src_t)
    xd = prep(x_dst_t)
    hs = prep(hh_src_t)
    hd = prep(hh_dst_t)

    # Weight packing for the feature-major layout (y = W^T x + b^T).
    # MXU operands in bf16; VPU-side params stay f32.
    w1r = params["w1r"].T.astype(jnp.float32)      # [H, 1]  (radial column)
    w1s = params["w1s"].T.astype(jnp.bfloat16)     # [H, F]
    w1d = params["w1d"].T.astype(jnp.bfloat16)     # [H, F]
    b1 = params["b1"].T.astype(jnp.float32)        # [H, 1]
    w2 = params["w2"].T.astype(jnp.bfloat16)       # [H, H]
    b2 = params["b2"].T.astype(jnp.float32)
    w3 = params["w3"].T.astype(jnp.bfloat16)       # [H, H]
    b3 = params["b3"].T.astype(jnp.float32)
    w4 = params["w4"].astype(jnp.float32)          # [H, 1]

    edge_spec = lambda rows: pl.BlockSpec((rows, tile), lambda i: (0, i))
    full_spec = lambda arr: pl.BlockSpec(arr.shape, lambda i: (0, 0))

    in_specs = [
        edge_spec(C), edge_spec(C), edge_spec(F), edge_spec(F),
        full_spec(w1r), full_spec(w1s), full_spec(w1d), full_spec(b1),
        full_spec(w2), full_spec(b2),
        full_spec(w3), full_spec(b3),
        full_spec(w4),
    ]
    out_specs = [edge_spec(4), edge_spec(H)]
    out_shape = [
        jax.ShapeDtypeStruct((4, e_pad), jnp.float32),   # radial ++ trans slab
        jax.ShapeDtypeStruct((H, e_pad), jnp.float32),   # edge_feature
    ]

    # Advisory costs so XLA can schedule surrounding ops around the call.
    flops = int(e_pad) * (4 * F * H + 4 * H * H + 10 * H + 8 * C)
    transcendentals = int(e_pad) * (3 * H + 2)
    bytes_accessed = int(e_pad) * 4 * (2 * C + 2 * F + 4 + H)

    kernel = functools.partial(_edge_message_kernel, use_tanh=use_tanh)
    rt, ef = pl.pallas_call(
        kernel,
        out_shape=out_shape,
        grid_spec=pltpu.PrefetchScalarGridSpec(
            num_scalar_prefetch=0,
            grid=(n_tiles,),
            in_specs=in_specs,
            out_specs=out_specs,
        ),
        compiler_params=pltpu.CompilerParams(
            # Edge tiles are fully independent -> shard across both v7x TCs.
            dimension_semantics=("parallel",),
            vmem_limit_bytes=vmem_limit_bytes,
        ),
        cost_estimate=pl.CostEstimate(
            flops=flops,
            transcendentals=transcendentals,
            bytes_accessed=bytes_accessed,
        ),
    )(xs, xd, hs, hd, w1r, w1s, w1d, b1, w2, b2, w3, b3, w4)

    if pad:
        rt = rt[:, :E]
        ef = ef[:, :E]
    # TODO(synk): optionally emit edge_feature / trans as bf16 outputs if the
    # downstream consumer tolerates it (cuts output HBM bytes ~45%).
    return {"radial": rt[0:1], "trans": rt[1:4], "edge_feature": ef}


def init_params(key, input_nf, hidden_nf):
    """Deterministic synthetic init mirroring the module's parameter shapes."""
    in_dim = 2 * input_nf + 1
    ks = jax.random.split(key, 8)

    def glorot(k, shape, gain=1.0):
        fan_in, fan_out = shape
        limit = gain * jnp.sqrt(6.0 / (fan_in + fan_out))
        return jax.random.uniform(k, shape, jnp.float32, -limit, limit)

    w1 = glorot(ks[0], (in_dim, hidden_nf))           # edge_mlp linear 1
    return {
        "w1r": w1[:1, :],                             # row for radial0
        "w1s": w1[1 : 1 + input_nf, :],               # rows for src hh
        "w1d": w1[1 + input_nf :, :],                 # rows for dst hh
        "b1": jax.random.uniform(ks[1], (1, hidden_nf), jnp.float32, -0.1, 0.1),
        "w2": glorot(ks[2], (hidden_nf, hidden_nf)),  # edge_mlp linear 2
        "b2": jax.random.uniform(ks[3], (1, hidden_nf), jnp.float32, -0.1, 0.1),
        "w3": glorot(ks[4], (hidden_nf, hidden_nf)),  # coord_mlp linear 1
        "b3": jax.random.uniform(ks[5], (1, hidden_nf), jnp.float32, -0.1, 0.1),
        "w4": glorot(ks[6], (hidden_nf, 1), gain=0.001),  # xavier gain=0.001, no bias
    }


def _reference(x_src, x_dst, hh_src, hh_dst, p, use_tanh=True):
    """Pure-JAX f32 reference matching the PyTorch module forward."""
    d = x_src - x_dst
    radial = jnp.sum(d * d, axis=1, keepdims=True)
    feat = jnp.concatenate([radial, hh_src, hh_dst], axis=1)
    w1 = jnp.concatenate([p["w1r"], p["w1s"], p["w1d"]], axis=0)
    h1 = jax.nn.silu(feat @ w1 + p["b1"])
    ef = jax.nn.silu(h1 @ p["w2"] + p["b2"])
    c1 = jax.nn.silu(ef @ p["w3"] + p["b3"])
    c2 = c1 @ p["w4"]
    if use_tanh:
        c2 = jnp.tanh(c2)
    return {"radial": radial, "trans": d * c2, "edge_feature": ef}


if __name__ == "__main__":
    input_nf = 8
    hidden_nf = 32
    num_edges = 256

    key = jax.random.PRNGKey(0)
    k_param, k_xs, k_xd, k_hs, k_hd = jax.random.split(key, 5)

    params = init_params(k_param, input_nf, hidden_nf)
    # Module-style row-major tensors (as the DGL edge batch would provide).
    x_src = jax.random.normal(k_xs, (num_edges, 3), jnp.float32)
    x_dst = jax.random.normal(k_xd, (num_edges, 3), jnp.float32)
    hh_src = jax.random.normal(k_hs, (num_edges, input_nf), jnp.float32)
    hh_dst = jax.random.normal(k_hd, (num_edges, input_nf), jnp.float32)

    # The kernel consumes/produces feature-major tensors; the transposes below
    # are test-only plumbing (a production pipeline keeps edges lane-major).
    out = relative_position_cord_message(
        x_src.T, x_dst.T, hh_src.T, hh_dst.T, params, use_tanh=True
    )
    jax.block_until_ready(out)

    ref = _reference(x_src, x_dst, hh_src, hh_dst, params, use_tanh=True)

    # bf16 MXU operands => relaxed tolerances on the MLP outputs; the radial /
    # coord_diff path stays f32 and remains tight.
    tol = {
        "radial": (1e-5, 1e-5),
        "trans": (1e-3, 2e-2),
        "edge_feature": (5e-2, 5e-2),
    }
    for name in ("radial", "trans", "edge_feature"):
        atol, rtol = tol[name]
        got = out[name].T                      # back to [E, feat] for comparison
        assert got.shape == ref[name].shape, name
        assert jnp.allclose(got, ref[name], atol=atol, rtol=rtol), name

    print("KERNEL_OK")
</pallas_src>

<mosaic_0001>
module attributes {stable_mosaic.version = 11 : i64} {
  func.func @_edge_message_kernel(%arg0: i32, %arg1: memref<3x128xf32, #tpu.memory_space<vmem>>, %arg2: memref<3x128xf32, #tpu.memory_space<vmem>>, %arg3: memref<8x128xf32, #tpu.memory_space<vmem>>, %arg4: memref<8x128xf32, #tpu.memory_space<vmem>>, %arg5: memref<32x1xf32, #tpu.memory_space<vmem>>, %arg6: memref<32x8xbf16, #tpu.memory_space<vmem>>, %arg7: memref<32x8xbf16, #tpu.memory_space<vmem>>, %arg8: memref<32x1xf32, #tpu.memory_space<vmem>>, %arg9: memref<32x32xbf16, #tpu.memory_space<vmem>>, %arg10: memref<32x1xf32, #tpu.memory_space<vmem>>, %arg11: memref<32x32xbf16, #tpu.memory_space<vmem>>, %arg12: memref<32x1xf32, #tpu.memory_space<vmem>>, %arg13: memref<32x1xf32, #tpu.memory_space<vmem>>, %arg14: memref<4x128xf32, #tpu.memory_space<vmem>>, %arg15: memref<32x128xf32, #tpu.memory_space<vmem>>) attributes {dimension_semantics = [#tpu.dimension_semantics<parallel>], iteration_bounds = array<i64: 2>, scalar_prefetch = 0 : i64, scratch_operands = 0 : i64, tpu.core_type = #tpu.core_type<tc>, window_params = [{transform_indices = @transform_0, window_bounds = array<i64: 3, 128>}, {transform_indices = @transform_1, window_bounds = array<i64: 3, 128>}, {transform_indices = @transform_2, window_bounds = array<i64: 8, 128>}, {transform_indices = @transform_3, window_bounds = array<i64: 8, 128>}, {pipeline_mode = #tpu.pipeline_mode<synchronous>, transform_indices = @transform_4, window_bounds = array<i64: 32, 1>}, {pipeline_mode = #tpu.pipeline_mode<synchronous>, transform_indices = @transform_5, window_bounds = array<i64: 32, 8>}, {pipeline_mode = #tpu.pipeline_mode<synchronous>, transform_indices = @transform_6, window_bounds = array<i64: 32, 8>}, {pipeline_mode = #tpu.pipeline_mode<synchronous>, transform_indices = @transform_7, window_bounds = array<i64: 32, 1>}, {pipeline_mode = #tpu.pipeline_mode<synchronous>, transform_indices = @transform_8, window_bounds = array<i64: 32, 32>}, {pipeline_mode = #tpu.pipeline_mode<synchronous>, transform_indices = @transform_9, window_bounds = array<i64: 32, 1>}, {pipeline_mode = #tpu.pipeline_mode<synchronous>, transform_indices = @transform_10, window_bounds = array<i64: 32, 32>}, {pipeline_mode = #tpu.pipeline_mode<synchronous>, transform_indices = @transform_11, window_bounds = array<i64: 32, 1>}, {pipeline_mode = #tpu.pipeline_mode<synchronous>, transform_indices = @transform_12, window_bounds = array<i64: 32, 1>}, {transform_indices = @transform_13, window_bounds = array<i64: 4, 128>}, {transform_indices = @transform_14, window_bounds = array<i64: 32, 128>}]} {
    %c0 = arith.constant 0 : index
    %c0_0 = arith.constant 0 : index
    %0 = vector.load %arg1[%c0, %c0_0] : memref<3x128xf32, #tpu.memory_space<vmem>>, vector<3x128xf32>
    %c0_1 = arith.constant 0 : index
    %c0_2 = arith.constant 0 : index
    %1 = vector.load %arg2[%c0_1, %c0_2] : memref<3x128xf32, #tpu.memory_space<vmem>>, vector<3x128xf32>
    %2 = arith.subf %0, %1 : vector<3x128xf32>
    %3 = arith.mulf %2, %2 : vector<3x128xf32>
    %cst = arith.constant dense<0.000000e+00> : vector<128xf32>
    %4 = vector.multi_reduction <add>, %3, %cst [0] : vector<3x128xf32> to vector<128xf32>
    %5 = vector.shape_cast %4 : vector<128xf32> to vector<1x128xf32>
    %c0_3 = arith.constant 0 : index
    %c0_4 = arith.constant 0 : index
    %6 = vector.load %arg5[%c0_3, %c0_4] : memref<32x1xf32, #tpu.memory_space<vmem>>, vector<32x1xf32>
    %7 = vector.broadcast %6 : vector<32x1xf32> to vector<32x128xf32>
    %8 = vector.broadcast %5 : vector<1x128xf32> to vector<32x128xf32>
    %9 = arith.mulf %7, %8 : vector<32x128xf32>
    %c0_5 = arith.constant 0 : index
    %c0_6 = arith.constant 0 : index
    %10 = vector.load %arg6[%c0_5, %c0_6] : memref<32x8xbf16, #tpu.memory_space<vmem>>, vector<32x8xbf16>
    %c0_7 = arith.constant 0 : index
    %c0_8 = arith.constant 0 : index
    %11 = vector.load %arg3[%c0_7, %c0_8] : memref<8x128xf32, #tpu.memory_space<vmem>>, vector<8x128xf32>
    %12 = arith.truncf %11 : vector<8x128xf32> to vector<8x128xbf16>
    %cst_9 = arith.constant dense<0.000000e+00> : vector<32x128xf32>
    %13 = tpu.matmul %10, %12, %cst_9 {dimension_numbers = #tpu.dot_dimension_numbers<[1], [0], [0], [1], [0, 0, 1, 1], [], []>} : vector<32x8xbf16>, vector<8x128xbf16>, vector<32x128xf32> -> vector<32x128xf32>
    %14 = arith.addf %9, %13 : vector<32x128xf32>
    %c0_10 = arith.constant 0 : index
    %c0_11 = arith.constant 0 : index
    %15 = vector.load %arg7[%c0_10, %c0_11] : memref<32x8xbf16, #tpu.memory_space<vmem>>, vector<32x8xbf16>
    %c0_12 = arith.constant 0 : index
    %c0_13 = arith.constant 0 : index
    %16 = vector.load %arg4[%c0_12, %c0_13] : memref<8x128xf32, #tpu.memory_space<vmem>>, vector<8x128xf32>
    %17 = arith.truncf %16 : vector<8x128xf32> to vector<8x128xbf16>
    %cst_14 = arith.constant dense<0.000000e+00> : vector<32x128xf32>
    %18 = tpu.matmul %15, %17, %cst_14 {dimension_numbers = #tpu.dot_dimension_numbers<[1], [0], [0], [1], [0, 0, 1, 1], [], []>} : vector<32x8xbf16>, vector<8x128xbf16>, vector<32x128xf32> -> vector<32x128xf32>
    %19 = arith.addf %14, %18 : vector<32x128xf32>
    %c0_15 = arith.constant 0 : index
    %c0_16 = arith.constant 0 : index
    %20 = vector.load %arg8[%c0_15, %c0_16] : memref<32x1xf32, #tpu.memory_space<vmem>>, vector<32x1xf32>
    %21 = vector.broadcast %20 : vector<32x1xf32> to vector<32x128xf32>
    %22 = arith.addf %19, %21 : vector<32x128xf32>
    %cst_17 = arith.constant 5.000000e-01 : f32
    %23 = vector.broadcast %cst_17 : f32 to vector<32x128xf32>
    %24 = arith.mulf %22, %23 : vector<32x128xf32>
    %cst_18 = arith.constant 5.000000e-01 : f32
    %25 = vector.broadcast %cst_18 : f32 to vector<32x128xf32>
    %26 = arith.mulf %25, %22 : vector<32x128xf32>
    %27 = math.tanh %26 : vector<32x128xf32>
    %cst_19 = arith.constant 1.000000e+00 : f32
    %28 = vector.broadcast %cst_19 : f32 to vector<32x128xf32>
    %29 = arith.addf %27, %28 : vector<32x128xf32>
    %30 = arith.mulf %24, %29 : vector<32x128xf32>
    %c0_20 = arith.constant 0 : index
    %c0_21 = arith.constant 0 : index
    %31 = vector.load %arg9[%c0_20, %c0_21] : memref<32x32xbf16, #tpu.memory_space<vmem>>, vector<32x32xbf16>
    %32 = arith.truncf %30 : vector<32x128xf32> to vector<32x128xbf16>
    %cst_22 = arith.constant dense<0.000000e+00> : vector<32x128xf32>
    %33 = tpu.matmul %31, %32, %cst_22 {dimension_numbers = #tpu.dot_dimension_numbers<[1], [0], [0], [1], [0, 0, 1, 1], [], []>} : vector<32x32xbf16>, vector<32x128xbf16>, vector<32x128xf32> -> vector<32x128xf32>
    %c0_23 = arith.constant 0 : index
    %c0_24 = arith.constant 0 : index
    %34 = vector.load %arg10[%c0_23, %c0_24] : memref<32x1xf32, #tpu.memory_space<vmem>>, vector<32x1xf32>
    %35 = vector.broadcast %34 : vector<32x1xf32> to vector<32x128xf32>
    %36 = arith.addf %33, %35 : vector<32x128xf32>
    %cst_25 = arith.constant 5.000000e-01 : f32
    %37 = vector.broadcast %cst_25 : f32 to vector<32x128xf32>
    %38 = arith.mulf %36, %37 : vector<32x128xf32>
    %cst_26 = arith.constant 5.000000e-01 : f32
    %39 = vector.broadcast %cst_26 : f32 to vector<32x128xf32>
    %40 = arith.mulf %39, %36 : vector<32x128xf32>
    %41 = math.tanh %40 : vector<32x128xf32>
    %cst_27 = arith.constant 1.000000e+00 : f32
    %42 = vector.broadcast %cst_27 : f32 to vector<32x128xf32>
    %43 = arith.addf %41, %42 : vector<32x128xf32>
    %44 = arith.mulf %38, %43 : vector<32x128xf32>
    %c0_28 = arith.constant 0 : index
    %c0_29 = arith.constant 0 : index
    %45 = vector.load %arg15[%c0_28, %c0_29] : memref<32x128xf32, #tpu.memory_space<vmem>>, vector<32x128xf32>
    tpu.vector_store %arg15[%c0_28, %c0_29], %44 {strides = array<i32>} : memref<32x128xf32, #tpu.memory_space<vmem>>, vector<32x128xf32>,
    %c0_30 = arith.constant 0 : index
    %c0_31 = arith.constant 0 : index
    %46 = vector.load %arg11[%c0_30, %c0_31] : memref<32x32xbf16, #tpu.memory_space<vmem>>, vector<32x32xbf16>
    %47 = arith.truncf %44 : vector<32x128xf32> to vector<32x128xbf16>
    %cst_32 = arith.constant dense<0.000000e+00> : vector<32x128xf32>
    %48 = tpu.matmul %46, %47, %cst_32 {dimension_numbers = #tpu.dot_dimension_numbers<[1], [0], [0], [1], [0, 0, 1, 1], [], []>} : vector<32x32xbf16>, vector<32x128xbf16>, vector<32x128xf32> -> vector<32x128xf32>
    %c0_33 = arith.constant 0 : index
    %c0_34 = arith.constant 0 : index
    %49 = vector.load %arg12[%c0_33, %c0_34] : memref<32x1xf32, #tpu.memory_space<vmem>>, vector<32x1xf32>
    %50 = vector.broadcast %49 : vector<32x1xf32> to vector<32x128xf32>
    %51 = arith.addf %48, %50 : vector<32x128xf32>
    %cst_35 = arith.constant 5.000000e-01 : f32
    %52 = vector.broadcast %cst_35 : f32 to vector<32x128xf32>
    %53 = arith.mulf %51, %52 : vector<32x128xf32>
    %cst_36 = arith.constant 5.000000e-01 : f32
    %54 = vector.broadcast %cst_36 : f32 to vector<32x128xf32>
    %55 = arith.mulf %54, %51 : vector<32x128xf32>
    %56 = math.tanh %55 : vector<32x128xf32>
    %cst_37 = arith.constant 1.000000e+00 : f32
    %57 = vector.broadcast %cst_37 : f32 to vector<32x128xf32>
    %58 = arith.addf %56, %57 : vector<32x128xf32>
    %59 = arith.mulf %53, %58 : vector<32x128xf32>
    %c0_38 = arith.constant 0 : index
    %c0_39 = arith.constant 0 : index
    %60 = vector.load %arg13[%c0_38, %c0_39] : memref<32x1xf32, #tpu.memory_space<vmem>>, vector<32x1xf32>
    %61 = vector.broadcast %60 : vector<32x1xf32> to vector<32x128xf32>
    %62 = arith.mulf %61, %59 : vector<32x128xf32>
    %cst_40 = arith.constant dense<0.000000e+00> : vector<128xf32>
    %63 = vector.multi_reduction <add>, %62, %cst_40 [0] : vector<32x128xf32> to vector<128xf32>
    %64 = vector.shape_cast %63 : vector<128xf32> to vector<1x128xf32>
    %65 = math.tanh %64 : vector<1x128xf32>
    %c0_41 = arith.constant 0 : index
    %c0_42 = arith.constant 0 : index
    %66 = vector.load %arg14[%c0_41, %c0_42] : memref<4x128xf32, #tpu.memory_space<vmem>>, vector<1x128xf32>
    tpu.vector_store %arg14[%c0_41, %c0_42], %5 {strides = array<i32>} : memref<4x128xf32, #tpu.memory_space<vmem>>, vector<1x128xf32>,
    %67 = vector.broadcast %65 : vector<1x128xf32> to vector<3x128xf32>
    %68 = arith.mulf %2, %67 : vector<3x128xf32>
    %c1 = arith.constant 1 : index
    %c0_43 = arith.constant 0 : index
    %69 = vector.load %arg14[%c1, %c0_43] : memref<4x128xf32, #tpu.memory_space<vmem>>, vector<3x128xf32>
    tpu.vector_store %arg14[%c1, %c0_43], %68 {strides = array<i32>} : memref<4x128xf32, #tpu.memory_space<vmem>>, vector<3x128xf32>,
    return
  }
  func.func @transform_0(%arg0: i32) -> (i32, i32) {
    %c0_i32 = arith.constant 0 : i32
    %c0_i32_0 = arith.constant 0 : i32
    return %c0_i32, %arg0 : i32, i32
  }
  func.func @transform_1(%arg0: i32) -> (i32, i32) {
    %c0_i32 = arith.constant 0 : i32
    %c0_i32_0 = arith.constant 0 : i32
    return %c0_i32, %arg0 : i32, i32
  }
  func.func @transform_2(%arg0: i32) -> (i32, i32) {
    %c0_i32 = arith.constant 0 : i32
    %c0_i32_0 = arith.constant 0 : i32
    return %c0_i32, %arg0 : i32, i32
  }
  func.func @transform_3(%arg0: i32) -> (i32, i32) {
    %c0_i32 = arith.constant 0 : i32
    %c0_i32_0 = arith.constant 0 : i32
    return %c0_i32, %arg0 : i32, i32
  }
  func.func @transform_4(%arg0: i32) -> (i32, i32) {
    %c0_i32 = arith.constant 0 : i32
    %c0_i32_0 = arith.constant 0 : i32
    %c0_i32_1 = arith.constant 0 : i32
    return %c0_i32, %c0_i32_0 : i32, i32
  }
  func.func @transform_5(%arg0: i32) -> (i32, i32) {
    %c0_i32 = arith.constant 0 : i32
    %c0_i32_0 = arith.constant 0 : i32
    %c0_i32_1 = arith.constant 0 : i32
    return %c0_i32, %c0_i32_0 : i32, i32
  }
  func.func @transform_6(%arg0: i32) -> (i32, i32) {
    %c0_i32 = arith.constant 0 : i32
    %c0_i32_0 = arith.constant 0 : i32
    %c0_i32_1 = arith.constant 0 : i32
    return %c0_i32, %c0_i32_0 : i32, i32
  }
  func.func @transform_7(%arg0: i32) -> (i32, i32) {
    %c0_i32 = arith.constant 0 : i32
    %c0_i32_0 = arith.constant 0 : i32
    %c0_i32_1 = arith.constant 0 : i32
    return %c0_i32, %c0_i32_0 : i32, i32
  }
  func.func @transform_8(%arg0: i32) -> (i32, i32) {
    %c0_i32 = arith.constant 0 : i32
    %c0_i32_0 = arith.constant 0 : i32
    %c0_i32_1 = arith.constant 0 : i32
    return %c0_i32, %c0_i32_0 : i32, i32
  }
  func.func @transform_9(%arg0: i32) -> (i32, i32) {
    %c0_i32 = arith.constant 0 : i32
    %c0_i32_0 = arith.constant 0 : i32
    %c0_i32_1 = arith.constant 0 : i32
    return %c0_i32, %c0_i32_0 : i32, i32
  }
  func.func @transform_10(%arg0: i32) -> (i32, i32) {
    %c0_i32 = arith.constant 0 : i32
    %c0_i32_0 = arith.constant 0 : i32
    %c0_i32_1 = arith.constant 0 : i32
    return %c0_i32, %c0_i32_0 : i32, i32
  }
  func.func @transform_11(%arg0: i32) -> (i32, i32) {
    %c0_i32 = arith.constant 0 : i32
    %c0_i32_0 = arith.constant 0 : i32
    %c0_i32_1 = arith.constant 0 : i32
    return %c0_i32, %c0_i32_0 : i32, i32
  }
  func.func @transform_12(%arg0: i32) -> (i32, i32) {
    %c0_i32 = arith.constant 0 : i32
    %c0_i32_0 = arith.constant 0 : i32
    %c0_i32_1 = arith.constant 0 : i32
    return %c0_i32, %c0_i32_0 : i32, i32
  }
  func.func @transform_13(%arg0: i32) -> (i32, i32) {
    %c0_i32 = arith.constant 0 : i32
    %c0_i32_0 = arith.constant 0 : i32
    return %c0_i32, %arg0 : i32, i32
  }
  func.func @transform_14(%arg0: i32) -> (i32, i32) {
    %c0_i32 = arith.constant 0 : i32
    %c0_i32_0 = arith.constant 0 : i32
    return %c0_i32, %arg0 : i32, i32
  }
}

</mosaic_0001>

<bundles_post_ra>
// kernel: tpu_custom_call.1
= control target key start
LH: loop header
LB: loop body
LE: loop exit
PB: predicated region body
PF: predicated region fallthrough
CT: control target
= control target key end

     0   :  { %s1801_s0 = inlined_call_operand.vmem [shape: f32[3,256], index: 0, kind: input, shape index: {}]   ;;  %s1802_s1 = inlined_call_operand.vmem [shape: f32[3,256], index: 1, kind: input, shape index: {}]   ;;  %s1803_s2 = inlined_call_operand.vmem [shape: f32[8,256], index: 2, kind: input, shape index: {}]   ;;  %s1804_s3 = inlined_call_operand.vmem [shape: f32[8,256], index: 3, kind: input, shape index: {}]   ;;  %s1805_s4 = inlined_call_operand.vmem [shape: f32[32,1], index: 4, kind: input, shape index: {}]   ;;  %s1806_s5 = inlined_call_operand.vmem [shape: bf16[32,8], index: 5, kind: input, shape index: {}]   ;;  %s1807_s6 = inlined_call_operand.vmem [shape: bf16[32,8], index: 6, kind: input, shape index: {}]   ;;  %s1808_s7 = inlined_call_operand.vmem [shape: f32[32,1], index: 7, kind: input, shape index: {}]   ;;  %s1809_s8 = inlined_call_operand.vmem [shape: bf16[32,32], index: 8, kind: input, shape index: {}]   ;;  %s1810_s9 = inlined_call_operand.vmem [shape: f32[32,1], index: 9, kind: input, shape index: {}]   ;;  %s1811_s10 = inlined_call_operand.vmem [shape: bf16[32,32], index: 10, kind: input, shape index: {}]   ;;  %s1812_s11 = inlined_call_operand.vmem [shape: f32[32,1], index: 11, kind: input, shape index: {}]   ;;  %s1813_s12 = inlined_call_operand.vmem [shape: f32[32,1], index: 12, kind: input, shape index: {}]   ;;  %s1814_s13 = inlined_call_operand.hbm [shape: f32[4,256], index: 13, kind: output, shape index: {0}]   ;;  %s1815_s14 = inlined_call_operand.hbm [shape: f32[32,256], index: 14, kind: output, shape index: {1}]  }
   0x1   :  { %1821 = sst [smem:[#allocation13_spill]] %s1801_s0 }
   0x2   :  { %20 = vsyncpa [#allocation3], 0 }
   0x3   :  { %22 = vsyncpa [#allocation3 + $0x1], 0 }
   0x4   :  { %23 = vsyncpa [#allocation5], 0 }
   0x5   :  { %25 = vsyncpa [#allocation5 + $0x1], 0  ;;  %s1542_s29 = smov 0   ;;  %s1544_s30 = smov 0  }
   0x6   :  { %s1546_s15 = smov 0   ;;  %s1548_s16 = smov 0  }
   0x7 LB: > { %1822 = sst [smem:[#allocation8_spill]] %s1447_s29  ;;  %s1563_s17 = sadd.s32 4294967295, %s1459_s16   ;;  %s1459_s16 = sphi %s1548_s16, %s1833_s16   ;;  %s1455_s15 = sphi %s1546_s15, %s1835_s15   ;;  %s1451_s30 = sphi %s1544_s30, %s1837_s30   ;;  %s1447_s29 = sphi %s1542_s29, %s1836_s29  }
   0x8   : > { %1823 = sst [smem:[#allocation9_spill]] %s1455_s15  ;;  %s1197_s18 = sadd.s32 4294967294, %s1459_s16  }
   0x9   : > { %s1567_s19 = sadd.s32 1, %s1459_s16   ;;  %s331_s20 = sadd.s32 1, %s1455_s15 }
   0xa   : > { %1824 = sst [smem:[#allocation10_spill]] %s1567_s19  ;;  %s328_s21 = ssub.s32 %s1459_s16, %s1567_s19 }
   0xb   : > { %p341_p0 = scmp.ne.s32.totalorder %s1455_s15, %s1451_s30  ;;  %p329_p1 = scmp.eq.s32.totalorder %s328_s21, 0 }
   0xc   : > { %p342_p2 = scmp.eq.s32.totalorder %s1563_s17, 1  ;;  %p347_p3 = scmp.ne.s32.totalorder %s1451_s30, %s1447_s29 }
   0xd   : > { %p348_p4 = scmp.eq.s32.totalorder %s1197_s18, 1  ;;  %p1200_p7 = scmp.ge.s32.totalorder %s1459_s16, 1 }
   0xe   : > { %s1578_s22 = scalar_select %p329_p1, %s1455_s15, %s331_s20  }
   0xf   : > { %p1580_p5 = por %p342_p2, %p341_p0  ;;  %p1584_p6 = por %p348_p4, %p347_p3 }
  0x10   : > { %1825 = sst [smem:[#allocation11_spill]] %s1578_s22  ;;  %p447_p8 = scmp.lt.s32.totalorder %s1459_s16, 3 }
  0x11   : > { %s1827_s24 = scalar_select %p1584_p6, 1, 0 }
  0x12   : > { %p448_p9 = pnand %p1200_p7, %p447_p8 }
  0x13   : > { %1828 = sst [smem:[#allocation12_spill]] %s1827_s24  ;;  %p509_p10 = scmp.lt.s32.totalorder (!%p448_p9), %s1563_s17, 1  ;;  %v1331_v0 = vld [vmem:[%s1806_s5] sm:$0xff] (!%p448_p9)   ;;  %vm582_vm0 = vcmask (!%p448_p9), 64512   ;;  %v540_v1 = vld [vmem:[%s1805_s4 + $0x10] sm:$0xff] (!%p448_p9)  ;;  %v1461_v3 = vmov (!%p448_p9), 0  }
  0x14   : > { %451 = sbr.rel (%p448_p9) target bundleno = 821 (0x335), region = 72  ;;  %1245 = vmatprep.mubr.msk.bf16.mxu0 (!%p448_p9), %vm582_vm0, %v1331_v0  ;;  %v538_v2 = vld [vmem:[%s1805_s4] sm:$0xff] (!%p448_p9)  ;;  %1330 = vset.pattern.permute.xlu1 (!%p448_p9), %v1461_v3  ;;  %vm589_vm1 = vcmask (!%p448_p9), 1043456   ;;  %v541_v6 = vld [vmem:[%s1805_s4 + $0x18] sm:$0xff] (!%p448_p9)  ;;  %v539_v9 = vld [vmem:[%s1805_s4 + $0x8] sm:$0xff] (!%p448_p9)  ;;  %vm808_vm2 = vcmask (!%p448_p9), 261120  }
  0x15   : > { %1329 = vset.pattern.permute.xlu0 (!%p448_p9), %v1461_v3  ;;  %554 = vperm.xlu1 (!%p448_p9), %1330, %v540_v1   ;;  %v1332_v11 = vld [vmem:[%s1806_s5 + $0x8] sm:$0xff] (!%p448_p9)   ;;  %v1333_v12 = vld [vmem:[%s1807_s6] sm:$0xff] (!%p448_p9)   ;;  %v727_v16 = vld [vmem:[%s1808_s7 + $0x18] sm:$0xff] (!%p448_p9)  ;;  %s1829_s0 = sld [smem:[#allocation13_spill]] (!%p448_p9)  ;;  %vm530_vm3 = vcmask (!%p448_p9), 1042432   ;;  %s1707_s26 = sand.u32 (!%p448_p9), 1, %s1451_s30  }
  0x16   : > { %544 = vperm.xlu0 (!%p448_p9), %1329, %v538_v2   ;;  %v725_v13 = vld [vmem:[%s1808_s7 + $0x8] sm:$0xff] (!%p448_p9)  ;;  %v724_v15 = vld [vmem:[%s1808_s7] sm:$0xff] (!%p448_p9)  ;;  %v726_v17 = vld [vmem:[%s1808_s7 + $0x10] sm:$0xff] (!%p448_p9)  ;;  %s1201_s25 = sshll.u32 (!%p448_p9), %s1707_s26, 2 }
  0x17   : > { %v775_v18 = vld [vmem:[%s1810_s9 + $0x8] sm:$0xff] (!%p448_p9)  ;;  %v774_v19 = vld [vmem:[%s1810_s9] sm:$0xff] (!%p448_p9)  ;;  %v777_v21 = vld [vmem:[%s1810_s9 + $0x18] sm:$0xff] (!%p448_p9)  ;;  %s1715_s19 = scalar_lea.vmem (!%p448_p9), [#allocation2], %s1201_s25 }
  0x18   : > { %v1334_v20 = vld [vmem:[%s1807_s6 + $0x8] sm:$0xff] (!%p448_p9)   ;;  %v776_v22 = vld [vmem:[%s1810_s9 + $0x10] sm:$0xff] (!%p448_p9)  ;;  %v890_v24 = vld [vmem:[%s1812_s11] sm:$0xff] (!%p448_p9) }
  0x19   : > { %559 = vperm.xlu1 (!%p448_p9), %1330, %v541_v6   ;;  %v891_v23 = vld [vmem:[%s1812_s11 + $0x8] sm:$0xff] (!%p448_p9)  ;;  %v893_v25 = vld [vmem:[%s1812_s11 + $0x18] sm:$0xff] (!%p448_p9)  ;;  %v892_v26 = vld [vmem:[%s1812_s11 + $0x10] sm:$0xff] (!%p448_p9) }
  0x1a   : > { %549 = vperm.xlu0 (!%p448_p9), %1329, %v539_v9   ;;  %v996_v27 = vld [vmem:[%s1813_s12 + $0x8] sm:$0xff] (!%p448_p9)  ;;  %v995_v28 = vld [vmem:[%s1813_s12] sm:$0xff] (!%p448_p9)  ;;  %v998_v29 = vld [vmem:[%s1813_s12 + $0x18] sm:$0xff] (!%p448_p9) }
  0x1b   : > { %s1595_s27 = scalar_select %p509_p10, %s1563_s17, 1  ;;  %v997_v30 = vld [vmem:[%s1813_s12 + $0x10] sm:$0xff]  ;;  %v1335_v31 = vld [vmem:[%s1809_s8] sm:$0xff]  }
  0x1c   : > { %1259 = vmatprep.mubr.msk.bf16.mxu1 %vm808_vm2, %v1335_v31 }
  0x1d   : > { %s1205_s28 = sshll.u32 %s1595_s27, 3  ;;  %735 = vperm.xlu1 %1330, %v725_v13   ;;  %s1203_s18 = sshll.u32 %s1595_s27, 2 }
  0x1e   : > { %s520_s15 = scalar_lea.vmem %s1803_s2, %s1205_s28  ;;  %s524_s29 = scalar_lea.vmem %s1804_s3, %s1205_s28  ;;  %730 = vperm.xlu0 %1329, %v724_v15  }
  0x1f   : > { %v570_v4 = vld [vmem:[%s520_s15] sm:$0xff]  ;;  %s512_s21 = scalar_lea.vmem %s1829_s0, %s1203_s18  ;;  %s516_s15 = scalar_lea.vmem %s1802_s1, %s1203_s18 }
  0x20   : > { %v650_v5 = vld [vmem:[%s524_s29] sm:$0xff]  ;;  %v571_v7 = vpack.c.bf16 %v570_v4, %v570_v4  ;;  %s1202_s18 = sshll.u32 %s1707_s26, 5  ;;  %s1226_s27 = sshll.u32 %s1563_s17, 7 }
  0x21   : > { %v651_v8 = vpack.c.bf16 %v650_v5, %v650_v5  ;;  %745 = vperm.xlu1 %1330, %v727_v16   ;;  %v526_v32 = vld [vmem:[%s512_s21] sm:$0x7]  ;;  %s508_s20 = scalar_lea.vmem [#allocation4], %s1202_s18  ;;  %s1725_s28 = scalar_lea.hbm %s1815_s14, %s1226_s27 }
  0x22   : > { %1279 = vmatprep.subr.msk.bf16.mxu0 %vm589_vm1, %v571_v7  ;;  %v591_v10 = vsel %vm589_vm1, %v571_v7, 0  ;;  %740 = vperm.xlu0 %1329, %v726_v17   ;;  %v527_v33 = vld [vmem:[%s516_s15] sm:$0x7]  ;;  %s1067_s15 = sshll.u32 %s508_s20, 4  ;;  %s1462_s21 = smov [#allocation4]   ;;  %s1719_s15 = int_to_ptr.vmem [resolvable:$true] %s1067_s15 }
  0x23   : > { %1244 = vmatpush3.bf16.msra.mxu0 %v591_v10  ;;  %v669_v14 = vsel %vm589_vm1, %v651_v8, 0  ;;  %v1688_v34 = vsub.f32 %v526_v32, %v527_v33  ;;  %s1365_s22 = scalar_lea.vmem %s1719_s15, 512  ;;  %s1369_s25 = sshll.u32 %s1462_s21, 4  ;;  %s1370_s25 = int_to_ptr.vmem [resolvable:$false] %s1369_s25 }
  0x24   : > { %1280 = vmatprep.subr.msk.bf16.mxu0 %vm589_vm1, %v651_v8  ;;  %p1366_p11 = scmp.ne.s32.totalorder %s1719_s15, %s1365_s22  ;;  %p1372_p0 = scmp.lt.s32.totalorder %s1719_s15, %s1370_s25 }
  0x25   : > { %785 = vperm.xlu1 %1330, %v775_v18   ;;  %v529_v35 = vmul.f32 %v1688_v34, %v1688_v34 }
  0x26   : > { %1246 = vmatmul.mubr.msk.bf16.vlgmr.msra.gmra.mrb[0].mxu0 %vm582_vm0, %v1332_v11  ;;  %780 = vperm.xlu0 %1329, %v774_v19   ;;  %p1367_p12 = pnand %p1366_p11, %p1580_p5 }
  0x27   : > { %1250 = vmatpush3.bf16.msra.mxu0 %v669_v14  ;;  %1251 = vmatprep.mubr.msk.bf16.mxu0 %vm582_vm0, %v1333_v12  ;;  %v531_v36 = vsel %vm530_vm3, %v529_v35, 0.0 }
  0x28   : > { %v532_v37 = vrot.slane %v531_v36, 4  ;;  %p1368_p13 = pneg %p1367_p12 }
  0x29   : > { %795 = vperm.xlu1 %1330, %v777_v21   ;;  %v1336_v21 = vld [vmem:[%s1809_s8 + $0x8] sm:$0xff]  }
  0x2a   : > { %790 = vperm.xlu0 %1329, %v776_v22   ;;  %v533_v38 = vadd.f32 %v532_v37, %v531_v36  ;;  %v1337_v22 = vld [vmem:[%s1811_s10] sm:$0xff]  }
  0x2c   : > { %v534_v39 = vrot.slane %v533_v38, 2 }
  0x2d   : > { %901 = vperm.xlu1 %1330, %v891_v23  }
  0x2e   : > { %896 = vperm.xlu0 %1329, %v890_v24   ;;  %v535_v41 = vadd.f32 %v534_v39, %v533_v38 }
  0x30   : > { %v536_v43 = vrot.slane %v535_v41, 1 }
  0x31   : > { %911 = vperm.xlu1 %1330, %v893_v25  }
  0x32   : > { %1252 = vmatmul.mubr.msk.bf16.vlgmr.msra.gmra.mrb[0].mxu0 %vm582_vm0, %v1334_v20  ;;  %906 = vperm.xlu0 %1329, %v892_v26   ;;  %v1692_v46 = vadd.f32 %v536_v43, %v535_v41 }
  0x34   : > { %1033 = vst [vmem:[%s1715_s19] sm:$0x1] %v1692_v46 }
  0x35   : > { %1006 = vperm.xlu1 %1330, %v996_v27  }
  0x36   : > { %1001 = vperm.xlu0 %1329, %v995_v28  }
  0x39   : > { %1016 = vperm.xlu1 %1330, %v998_v29  }
  0x3a   : > { %1011 = vperm.xlu0 %1329, %v997_v30  }
  0x94   : > { %v555_v42 = vpop.permute.xlu1 %554 }
  0x95   : > { %v545_v40 = vpop.permute.xlu0 %544  ;;  %v564_v48 = vmul.f32 %v555_v42, %v1692_v46 }
  0x96   : > { %v562_v50 = vmul.f32 %v545_v40, %v1692_v46 }
  0x98   : > { %v560_v45 = vpop.permute.xlu1 %559 }
  0x99   : > { %v550_v44 = vpop.permute.xlu0 %549  ;;  %v565_v52 = vmul.f32 %v560_v45, %v1692_v46 }
  0x9a   : > { %v563_v55 = vmul.f32 %v550_v44, %v1692_v46 }
  0x9c   : > { %v736_v49 = vpop.permute.xlu1 %735 }
  0x9d   : > { %v731_v47 = vpop.permute.xlu0 %730 }
  0xa0   : > { %v746_v62 = vpop.permute.xlu1 %745 }
  0xa1   : > { %v741_v56 = vpop.permute.xlu0 %740 }
  0xa4   : > { %v786_v24 = vpop.permute.xlu1 %785 }
  0xa5   : > { %v781_v23 = vpop.permute.xlu0 %780 }
  0xa8   : > { %v796_v29 = vpop.permute.xlu1 %795 }
  0xa9   : > { %v791_v25 = vpop.permute.xlu0 %790 }
 0x105   : > { %v1253_v51 = vpop.f32.mrb[0].mxu0 }
 0x106   : > { %v1271_v53 = vadd.f32 %v1253_v51, %v564_v48  ;;  %v705_v54 = vpop.f32.mrb[1].mxu0 }
 0x107   : > { %v1272_v57 = vadd.f32 %v705_v54, %v562_v50  ;;  %v1254_v58 = vpop.f32.mrb[2].mxu0 }
 0x108   : > { %v750_v59 = vadd.f32 %v1271_v53, %v741_v56  ;;  %v1273_v60 = vadd.f32 %v1254_v58, %v565_v52  ;;  %v708_v61 = vpop.f32.mrb[3].mxu0 }
 0x109   : > { %v748_v63 = vadd.f32 %v1272_v57, %v731_v47  ;;  %v1274_v0 = vadd.f32 %v708_v61, %v563_v55  ;;  %v1338_v55 = vld [vmem:[%s1811_s10 + $0x8] sm:$0xff]  }
 0x10a   : > { %v754_v1 = vmul.f32 0.5, %v750_v59  ;;  %v751_v2 = vadd.f32 %v1273_v60, %v746_v62 }
 0x10b   : > { %v752_v3 = vmul.f32 0.5, %v748_v63  ;;  %v749_v4 = vadd.f32 %v1274_v0, %v736_v49 }
 0x10c   : > { %1339 = vtanh.f32 %v754_v1  ;;  %v755_v5 = vmul.f32 0.5, %v751_v2 }
 0x10d   : > { %1341 = vtanh.f32 %v752_v3  ;;  %v753_v6 = vmul.f32 0.5, %v749_v4 }
 0x10e   : > { %1343 = vtanh.f32 %v755_v5 }
 0x10f   : > { %1345 = vtanh.f32 %v753_v6 }
 0x116   : > { %v1340_v7 = vpop.eup %1339 }
 0x117   : > { %v1342_v8 = vpop.eup %1341  ;;  %v762_v9 = vadd.f32 1.0, %v1340_v7 }
 0x118   : > { %v1344_v10 = vpop.eup %1343  ;;  %v760_v11 = vadd.f32 1.0, %v1342_v8 }
 0x119   : > { %v1346_v12 = vpop.eup %1345  ;;  %v763_v13 = vadd.f32 1.0, %v1344_v10  ;;  %v766_v15 = vmul.f32 %v762_v9, %v754_v1 }
 0x11a   : > { %v761_v14 = vadd.f32 1.0, %v1346_v12  ;;  %v764_v17 = vmul.f32 %v760_v11, %v752_v3 }
 0x11b   : > { %v767_v16 = vmul.f32 %v763_v13, %v755_v5 }
 0x11c   : > { %v765_v18 = vmul.f32 %v761_v14, %v753_v6 }
 0x11d   : > { %v773_v19 = vpack.c.bf16 %v767_v16, %v766_v15 }
 0x11e   : > { %v772_v20 = vpack.c.bf16 %v765_v18, %v764_v17 }
 0x120   : > { %1255 = vmatprep.subr.bf16.mxu1 %v772_v20 }
 0x121   : > { %1256 = vmatpush3.bf16.msra.mxu1 %v772_v20 }
 0x122   : > { %1257 = vmatprep.subr.bf16.mxu1 %v773_v19 }
 0x125   : > { %1258 = vmatpush3.bf16.msra.mxu1 %v773_v19 }
 0x128   : > { %1260 = vmatmul.mubr.msk.bf16.vlgmr.msra.gmra.mrb[0].mxu1 %vm808_vm2, %v1336_v21 }
 0x129   : > { %1267 = vmatprep.mubr.msk.bf16.mxu1 %vm808_vm2, %v1337_v22 }
 0x1fb   : > { %v1261_v26 = vpop.f32.mrb[0].mxu1 }
 0x1fc   : > { %v858_v27 = vadd.f32 %v1261_v26, %v791_v25  ;;  %v849_v28 = vpop.f32.mrb[1].mxu1 }
 0x1fd   : > { %v850_v30 = vadd.f32 %v849_v28, %v781_v23  ;;  %v1262_v31 = vpop.f32.mrb[2].mxu1 }
 0x1fe   : > { %v866_v32 = vmul.f32 0.5, %v858_v27  ;;  %v861_v33 = vadd.f32 %v1262_v31, %v796_v29  ;;  %v852_v35 = vpop.f32.mrb[3].mxu1 }
 0x1ff   : > { %v864_v36 = vmul.f32 0.5, %v850_v30  ;;  %v853_v37 = vadd.f32 %v852_v35, %v786_v24 }
 0x200   : > { %1347 = vtanh.f32 %v866_v32  ;;  %v867_v38 = vmul.f32 0.5, %v861_v33 }
 0x201   : > { %1349 = vtanh.f32 %v864_v36  ;;  %v865_v39 = vmul.f32 0.5, %v853_v37 }
 0x202   : > { %1351 = vtanh.f32 %v867_v38 }
 0x203   : > { %1353 = vtanh.f32 %v865_v39 }
 0x20a   : > { %v1348_v40 = vpop.eup %1347 }
 0x20b   : > { %v1350_v41 = vpop.eup %1349  ;;  %v874_v42 = vadd.f32 1.0, %v1348_v40 }
 0x20c   : > { %v1352_v43 = vpop.eup %1351  ;;  %v872_v44 = vadd.f32 1.0, %v1350_v41 }
 0x20d   : > { %v1354_v45 = vpop.eup %1353  ;;  %v878_v47 = vmul.f32 %v874_v42, %v866_v32  ;;  %v875_v48 = vadd.f32 1.0, %v1352_v43 }
 0x20e   : > { %v876_v49 = vmul.f32 %v872_v44, %v864_v36  ;;  %v873_v50 = vadd.f32 1.0, %v1354_v45 }
 0x20f   : > { %882 = vst [vmem:[%s508_s20 + $0x10] sm:$0xff] %v878_v47  ;;  %v879_v51 = vmul.f32 %v875_v48, %v867_v38 }
 0x210   : > { %880 = vst [vmem:[%s508_s20] sm:$0xff] %v876_v49  ;;  %v877_v52 = vmul.f32 %v873_v50, %v865_v39 }
 0x211   : > { %883 = vst [vmem:[%s508_s20 + $0x18] sm:$0xff] %v879_v51  ;;  %v889_v53 = vpack.c.bf16 %v879_v51, %v878_v47 }
 0x212   : > { %881 = vst [vmem:[%s508_s20 + $0x8] sm:$0xff] %v877_v52  ;;  %v888_v54 = vpack.c.bf16 %v877_v52, %v876_v49  ;;  %s1371_s20 = scalar_lea.vmem %s1370_s25, 1024 }
 0x213   : > { %p1373_p1 = scmp.lt.s32.totalorder %s1371_s20, %s1365_s22 }
 0x214   : > { %1263 = vmatprep.subr.bf16.mxu1 %v888_v54 }
 0x215   : > { %1264 = vmatpush3.bf16.msra.mxu1 %v888_v54  ;;  %p1374_p2 = por %p1373_p1, %p1372_p0 }
 0x216   : > { %1265 = vmatprep.subr.bf16.mxu1 %v889_v53 }
 0x217   : > { %p1375_p3 = pnand %p1374_p2, %p1368_p13 }
 0x219   : > { %1266 = vmatpush3.bf16.msra.mxu1 %v889_v53 }
 0x21c   : > { %1268 = vmatmul.mubr.msk.bf16.vlgmr.msra.gmra.mrb[4].mxu1 %vm808_vm2, %v1338_v55 }
 0x21d   : > { %1378 = shalt.err (!%p1375_p3)
}
 0x21e   : > { %s1379_s27 = scalar_lea.hbm %s1725_s28, 512  ;;  %s1383_s21 = scalar_lea.hbm %s1815_s14, 1024 }
 0x21f   : > { %p1380_p4 = scmp.ne.s32.totalorder %s1725_s28, %s1379_s27  ;;  %p1384_p9 = scmp.lt.u32.totalorder %s1725_s28, %s1815_s14 }
 0x220   : > { %p1385_p10 = scmp.lt.u32.totalorder %s1383_s21, %s1379_s27  ;;  %p1387_p12 = scmp.lt.u32.totalorder %s1379_s27, %s1725_s28 }
 0x221   : > { %p1381_p7 = pnand %p1380_p4, %p1580_p5 }
 0x222   : > { %p1386_p11 = por %p1385_p10, %p1384_p9 }
 0x223   : > { %p1382_p8 = pneg %p1381_p7 }
 0x224   : > { %p1388_p13 = por %p1387_p12, %p1386_p11 }
 0x226   : > { %p1389_p0 = pnand %p1388_p13, %p1382_p8 }
 0x228   : > { %1392 = shalt.err (!%p1389_p0)
}
 0x229   : > { %s1463_s22 = smov 128   ;;  %s1464_s20 = smov 256   ;;  %v897_v46 = vpop.permute.xlu0 %896  ;;  %v902_v56 = vpop.permute.xlu1 %901 }
 0x22a   : > { %s1465_s0 = smov 8   ;;  %s1830_s29 = scalar_lea.sflag [#allocation5], %s1707_s26 }
 0x22b   : > { %1282 = dma.vmem_to_hbm [thread:$0]  (%p1580_p5), %s1719_s15, 512, %s1725_s28, %s1830_s29, %s1463_s22, %s1464_s20, %s1465_s0  }
 0x22c   : > { %s1225_s0 = sshll.u32 %s1563_s17, 6  ;;  %s1055_s15 = sshll.u32 %s1715_s19, 4  ;;  %s1759_s15 = int_to_ptr.vmem [resolvable:$true] %s1055_s15 }
 0x22d   : > { %v907_v57 = vpop.permute.xlu0 %906  ;;  %v912_v61 = vpop.permute.xlu1 %911  ;;  %s1757_s27 = scalar_lea.hbm %s1814_s13, %s1225_s0  ;;  %s1037_s24 = scalar_lea.sflag [#allocation3], %s1707_s26 }
 0x22e   : > { %s1393_s21 = scalar_lea.vmem %s1759_s15, 64  ;;  %s1466_s17 = smov [#allocation2]  }
 0x22f   : > { %p1394_p1 = scmp.ne.s32.totalorder %s1759_s15, %s1393_s21  ;;  %s1397_s25 = sshll.u32 %s1466_s17, 4  ;;  %s1398_s25 = int_to_ptr.vmem [resolvable:$false] %s1397_s25 }
 0x230   : > { %s1399_s22 = scalar_lea.vmem %s1398_s25, 128  ;;  %p1400_p4 = scmp.lt.s32.totalorder %s1759_s15, %s1398_s25 }
 0x231   : > { %v1002_v13 = vpop.permute.xlu0 %1001  ;;  %v1007_v17 = vpop.permute.xlu1 %1006  ;;  %p1395_p2 = pnand %p1394_p1, %p1580_p5  ;;  %p1401_p7 = scmp.lt.s32.totalorder %s1399_s22, %s1393_s21 }
 0x233   : > { %p1396_p3 = pneg %p1395_p2  ;;  %p1402_p8 = por %p1401_p7, %p1400_p4 }
 0x235   : > { %v1012_v23 = vpop.permute.xlu0 %1011  ;;  %v1017_v26 = vpop.permute.xlu1 %1016  ;;  %p1403_p9 = pnand %p1402_p8, %p1396_p3 }
 0x2ef   : > { %v1269_v58 = vpop.f32.mrb[4].mxu1 }
 0x2f0   : > { %v973_v59 = vadd.f32 %v1269_v58, %v907_v57  ;;  %v964_v60 = vpop.f32.mrb[5].mxu1 }
 0x2f1   : > { %v965_v62 = vadd.f32 %v964_v60, %v897_v46  ;;  %v1270_v63 = vpop.f32.mrb[6].mxu1 }
 0x2f2   : > { %v981_v0 = vmul.f32 0.5, %v973_v59  ;;  %v976_v1 = vadd.f32 %v1270_v63, %v912_v61  ;;  %v967_v2 = vpop.f32.mrb[7].mxu1 }
 0x2f3   : > { %v979_v3 = vmul.f32 0.5, %v965_v62  ;;  %v968_v4 = vadd.f32 %v967_v2, %v902_v56 }
 0x2f4   : > { %1355 = vtanh.f32 %v981_v0  ;;  %v982_v5 = vmul.f32 0.5, %v976_v1 }
 0x2f5   : > { %1357 = vtanh.f32 %v979_v3  ;;  %v980_v6 = vmul.f32 0.5, %v968_v4 }
 0x2f6   : > { %1359 = vtanh.f32 %v982_v5 }
 0x2f7   : > { %1361 = vtanh.f32 %v980_v6 }
 0x2fe   : > { %v1356_v7 = vpop.eup %1355 }
 0x2ff   : > { %v1358_v8 = vpop.eup %1357  ;;  %v989_v10 = vadd.f32 1.0, %v1356_v7 }
 0x300   : > { %v1360_v9 = vpop.eup %1359  ;;  %v987_v11 = vadd.f32 1.0, %v1358_v8 }
 0x301   : > { %v1362_v12 = vpop.eup %1361  ;;  %v990_v15 = vadd.f32 1.0, %v1360_v9  ;;  %v993_v18 = vmul.f32 %v989_v10, %v981_v0 }
 0x302   : > { %v991_v14 = vmul.f32 %v987_v11, %v979_v3  ;;  %v988_v16 = vadd.f32 1.0, %v1362_v12 }
 0x303   : > { %v994_v21 = vmul.f32 %v990_v15, %v982_v5  ;;  %v1021_v24 = vmul.f32 %v1012_v23, %v993_v18 }
 0x304   : > { %v992_v19 = vmul.f32 %v988_v16, %v980_v6  ;;  %v1019_v20 = vmul.f32 %v1002_v13, %v991_v14 }
 0x305   : > { %v1022_v27 = vmul.f32 %v1017_v26, %v994_v21 }
 0x306   : > { %v1020_v22 = vmul.f32 %v1007_v17, %v992_v19 }
 0x308   : > { %v1023_v25 = vadd.f32 %v1020_v22, %v1019_v20 }
 0x30a   : > { %v1024_v28 = vadd.f32 %v1023_v25, %v1021_v24 }
 0x30c   : > { %v1025_v29 = vadd.f32 %v1024_v28, %v1022_v27 }
 0x30e   : > { %v1026_v30 = vrot.slane %v1025_v29, 4 }
 0x310   : > { %v1027_v31 = vadd.f32 %v1026_v30, %v1025_v29 }
 0x312   : > { %v1028_v32 = vrot.slane %v1027_v31, 2 }
 0x314   : > { %v1029_v33 = vadd.f32 %v1028_v32, %v1027_v31 }
 0x316   : > { %v1030_v35 = vrot.slane %v1029_v33, 1 }
 0x318   : > { %v1031_v36 = vadd.f32 %v1030_v35, %v1029_v33 }
 0x31a   : > { %1363 = vtanh.f32 %v1031_v36 }
 0x324   : > { %v1364_v37 = vpop.eup %1363 }
 0x325   : > { %v1034_v38 = vmul.f32 %v1364_v37, %v1688_v34 }
 0x327   : > { %1035 = vst [vmem:[%s1715_s19 + $0x1] sm:$0x7] %v1034_v38 }
 0x328   : > { %1406 = shalt.err (!%p1403_p9)
}
 0x329   : > { %s1407_s26 = scalar_lea.hbm %s1757_s27, 64  ;;  %s1411_s29 = scalar_lea.hbm %s1814_s13, 128 }
 0x32a   : > { %p1408_p10 = scmp.ne.s32.totalorder %s1757_s27, %s1407_s26  ;;  %p1412_p13 = scmp.lt.u32.totalorder %s1757_s27, %s1814_s13 }
 0x32b   : > { %p1413_p0 = scmp.lt.u32.totalorder %s1411_s29, %s1407_s26  ;;  %p1415_p2 = scmp.lt.u32.totalorder %s1407_s26, %s1757_s27 }
 0x32c   : > { %p1409_p11 = pnand %p1408_p10, %p1580_p5 }
 0x32d   : > { %p1414_p1 = por %p1413_p0, %p1412_p13 }
 0x32e   : > { %p1410_p12 = pneg %p1409_p11 }
 0x32f   : > { %p1416_p3 = por %p1415_p2, %p1414_p1 }
 0x331   : > { %p1417_p4 = pnand %p1416_p3, %p1410_p12 }
 0x333   : > { %1420 = shalt.err (!%p1417_p4)
}
 0x334   : > { %1281 = dma.vmem_to_hbm [thread:$0]  (%p1580_p5), %s1759_s15, 64, %s1757_s27, %s1037_s24  }
 0x335 PF: > { %s1831_s18 = sld [smem:[#allocation8_spill]]  ;;  %p1292_p7 = scmp.ge.s32.totalorder %s1459_s16, 2 }
 0x337   : > { %p1286_p8 = pnand %p1292_p7, %p1584_p6 }
 0x33b   : > { %s1082_s17 = sand.u32 1, %s1831_s18  }
 0x33c   : > { %s1083_s25 = scalar_lea.sflag [#allocation3], %s1082_s17 }
 0x33d   : > { %1438 = dma.done.wait (!%p1286_p8), %s1083_s25, 64  }
 0x33e   : > { %1440 = vsyncadd (!%p1286_p8), %s1083_s25, 4294967232  ;;  %s1092_s22 = scalar_lea.sflag [#allocation5], %s1082_s17 }
 0x33f   : > { %1442 = dma.done.wait (!%p1286_p8), %s1092_s22, 512  }
 0x340   : > { %1444 = vsyncadd (!%p1286_p8), %s1092_s22, 4294966784  ;;  %s1833_s16 = sld [smem:[#allocation10_spill]]  ;;  %s1834_s23 = sld [smem:[#allocation9_spill]] }
 0x341   : > { %s1835_s15 = sld [smem:[#allocation11_spill]]  ;;  %s1836_s29 = smov %s1451_s30 }
 0x346   : > { %p28_p5 = scmp.ge.s32.totalorder %s1833_s16, 4   ;;  %s1837_s30 = smov %s1834_s23 }
 0x348   :  { %30 = sbr.rel (!%p28_p5) target bundleno = 7 (0x7), region = 133 }
 0x34f   :  { %1097 = vsyncpa [#allocation3], 1 }
 0x350   :  { %1099 = vsyncpa [#allocation3 + $0x1], 1 }
 0x351   :  { %1100 = vsyncpa [#allocation5], 1 }
 0x352   :  { %1102 = vsyncpa [#allocation5 + $0x1], 1 }

</bundles_post_ra>
